<compile_context>
chip_gen: v5e
topology: v5e:2x2
jax: 0.10.0
libtpu: 0.0.40
codegen_flags: <defaults>
</compile_context>

<pallas_src>
import functools

import jax
import jax.numpy as jnp
from jax.experimental import pallas as pl
from jax.experimental.pallas import tpu as pltpu

LANES = 128  # vreg lane width


# --------------------------------------------------------------------------- #
# Kernel
# --------------------------------------------------------------------------- #
def _ema_kernel(omd_ref, ema_ref, cur_ref, out_ref):
    """out = ema + (1 - decay) * (cur - ema), blended in f32.

    omd_ref is a (1,) f32 SMEM scalar holding (1 - decay); reading it is free
    (scalar slot has slack in this DMA-bound kernel) and avoids recompiles.
    """
    omd = omd_ref[0]
    ema = ema_ref[...].astype(jnp.float32)
    cur = cur_ref[...].astype(jnp.float32)
    out_ref[...] = (ema + omd * (cur - ema)).astype(out_ref.dtype)


# --------------------------------------------------------------------------- #
# Tiling helpers
# --------------------------------------------------------------------------- #
@functools.lru_cache(maxsize=None)
def _vmem_budget_bytes() -> int:
    """~75% of physical VMEM: ~96 MiB on v5e/v6e (128 MiB), ~48 MiB on v7x (64 MiB)."""
    cap = None
    try:
        info = pltpu.get_tpu_info()
        cap = getattr(info, "vmem_capacity_bytes", None)
    except Exception:  # pragma: no cover - conservative fallback off-TPU
        cap = None
    if not cap:
        cap = 64 << 20  # conservative: v7x physical VMEM
    return int(cap) * 3 // 4


def _choose_block_rows(rows: int, itemsize: int, target_block_bytes: int,
                       vmem_budget: int) -> int:
    """Pick a (block_rows, 128) tile: dtype-scaled, VMEM-safe, >=2 equal steps."""
    sub_tile = max(8, 32 // itemsize)  # sublane tile: 8 f32, 16 bf16, 32 int8/fp8
    if rows < 2 * sub_tile:
        return rows  # full-extent single block (allowed even if < 8 rows)

    row_bytes = LANES * itemsize
    # ~target bytes per input block regardless of dtype.
    block_rows = max(sub_tile, target_block_bytes // row_bytes)
    # Shrink to fit the VMEM budget: 2 inputs + 1 output, double-buffered.
    max_rows_vmem = max(sub_tile, (vmem_budget - (4 << 20)) // (6 * row_bytes))
    block_rows = min(block_rows, max_rows_vmem)
    # >=2 grid steps (lets "parallel" shard across v7x's two TensorCores) and
    # equalized blocks so the last step is not a tiny masked remainder.
    num_steps = max(2, pl.cdiv(rows, block_rows))
    block_rows = pl.cdiv(pl.cdiv(rows, num_steps), sub_tile) * sub_tile
    return block_rows


def _ema_pallas_2d(ema_flat, cur_flat, omd, target_block_bytes):
    """Run the EMA blend on a lane-dense (rows, 128) slab."""
    rows, _ = ema_flat.shape
    dtype = ema_flat.dtype
    itemsize = jnp.dtype(dtype).itemsize
    budget = _vmem_budget_bytes()
    block_rows = _choose_block_rows(rows, itemsize, target_block_bytes, budget)
    grid = (pl.cdiv(rows, block_rows),)

    block_bytes = block_rows * LANES * itemsize
    vmem_limit = int(max(16 << 20, min(6 * block_bytes + (8 << 20), budget)))

    return pl.pallas_call(
        _ema_kernel,
        out_shape=jax.ShapeDtypeStruct((rows, LANES), dtype),
        grid=grid,
        in_specs=[
            pl.BlockSpec(memory_space=pltpu.MemorySpace.SMEM),        # (1,) 1-decay
            pl.BlockSpec((block_rows, LANES), lambda i: (i, 0)),      # ema tile
            pl.BlockSpec((block_rows, LANES), lambda i: (i, 0)),      # current tile
        ],
        out_specs=pl.BlockSpec((block_rows, LANES), lambda i: (i, 0)),
        input_output_aliases={1: 0},   # ema slab -> output (in place if donated)
        compiler_params=pltpu.CompilerParams(
            dimension_semantics=("parallel",),
            vmem_limit_bytes=vmem_limit),
    )(omd, ema_flat, cur_flat)


# --------------------------------------------------------------------------- #
# Public API
# --------------------------------------------------------------------------- #
def ema_update(ema_param: jax.Array,
               current_param: jax.Array,
               num_averaged=None,
               *,
               decay,
               target_block_bytes: int = 8 << 20,
               min_pallas_elems: int = 65536) -> jax.Array:
    """Pallas implementation of EMAUpdate.forward.

    `decay` may be a Python float or a traced jax scalar; it is fed to the
    kernel as an SMEM scalar, so varying decay does not trigger recompiles.
    `num_averaged` is accepted but unused, matching the PyTorch module.
    For true in-place EMA updates, call under jax.jit with ema_param donated.
    """
    del num_averaged  # unused, kept for signature compatibility
    assert ema_param.shape == current_param.shape
    assert ema_param.dtype == current_param.dtype

    orig_shape = ema_param.shape
    dtype = ema_param.dtype
    n = ema_param.size
    omd32 = 1.0 - jnp.asarray(decay, dtype=jnp.float32)   # scalar, may be traced

    def jnp_blend(e, c):
        e32 = e.astype(jnp.float32)
        c32 = c.astype(jnp.float32)
        return (e32 + omd32 * (c32 - e32)).astype(dtype)

    # Tiny tensors: pallas_call launch overhead dominates -> let XLA fuse it.
    if n == 0 or n < max(min_pallas_elems, LANES):
        return jnp_blend(ema_param, current_param)

    omd = omd32.reshape(1)
    n_aligned = (n // LANES) * LANES
    rows = n_aligned // LANES
    ema1d = ema_param.reshape(-1)
    cur1d = current_param.reshape(-1)

    if n_aligned == n:
        out2d = _ema_pallas_2d(ema1d.reshape(rows, LANES),
                               cur1d.reshape(rows, LANES),
                               omd, target_block_bytes)
        return out2d.reshape(orig_shape)

    # Large ragged tensor: Pallas on the 128-aligned prefix, jnp on the tail.
    head = _ema_pallas_2d(ema1d[:n_aligned].reshape(rows, LANES),
                          cur1d[:n_aligned].reshape(rows, LANES),
                          omd, target_block_bytes)
    tail = jnp_blend(ema1d[n_aligned:], cur1d[n_aligned:])
    return jnp.concatenate([head.reshape(-1), tail]).reshape(orig_shape)


def ema_update_tree(ema_params, current_params, *, decay,
                    small_leaf_elems: int = 1 << 20):
    """Fused EMA update over a pytree of parameters.

    Small leaves are flattened, grouped by dtype and concatenated into one
    lane-dense slab per dtype, updated by a single pallas_call (amortizes the
    per-call overhead that dominates real EMA workloads); large leaves keep
    their own aliased call to avoid the extra HBM pass of a concat/split.
    """
    # TODO(synk): for best performance keep the EMA state pre-flattened in one
    # persistent slab so even the concat/split here disappears.
    ema_leaves, treedef = jax.tree_util.tree_flatten(ema_params)
    cur_leaves, _ = jax.tree_util.tree_flatten(current_params)
    out_leaves = [None] * len(ema_leaves)

    small_idx = []
    for i, (e, c) in enumerate(zip(ema_leaves, cur_leaves)):
        if e.size >= small_leaf_elems:
            out_leaves[i] = ema_update(e, c, None, decay=decay)
        else:
            small_idx.append(i)

    by_dtype = {}
    for i in small_idx:
        by_dtype.setdefault(jnp.dtype(ema_leaves[i].dtype), []).append(i)
    for _, idxs in by_dtype.items():
        flat_e = jnp.concatenate([ema_leaves[i].reshape(-1) for i in idxs])
        flat_c = jnp.concatenate([cur_leaves[i].reshape(-1) for i in idxs])
        flat_o = ema_update(flat_e, flat_c, None, decay=decay,
                            min_pallas_elems=LANES)
        off = 0
        for i in idxs:
            sz = ema_leaves[i].size
            out_leaves[i] = flat_o[off:off + sz].reshape(ema_leaves[i].shape)
            off += sz

    return jax.tree_util.tree_unflatten(treedef, out_leaves)


# --------------------------------------------------------------------------- #
# Self-test
# --------------------------------------------------------------------------- #
if __name__ == "__main__":
    decay = 0.999

    def ref_fn(ema, cur):
        e32 = ema.astype(jnp.float32)
        c32 = cur.astype(jnp.float32)
        return (decay * e32 + (1.0 - decay) * c32).astype(ema.dtype)

    # 1) Small conv-weight-like param, forced through the Pallas path.
    k1, k2 = jax.random.split(jax.random.PRNGKey(0))
    shape1 = (2, 4, 16, 16)
    ema1 = jax.random.normal(k1, shape1, dtype=jnp.float32)
    cur1 = jax.random.normal(k2, shape1, dtype=jnp.float32)
    out1 = jax.block_until_ready(
        ema_update(ema1, cur1, 0, decay=decay, min_pallas_elems=0))
    assert out1.shape == shape1
    assert jnp.allclose(out1, ref_fn(ema1, cur1), atol=1e-5, rtol=1e-5), \
        "mismatch (small f32)"

    # 2) Larger param: multi-step equalized grid (small target block bytes).
    k3, k4 = jax.random.split(jax.random.PRNGKey(1))
    shape2 = (16, 4, 64, 64)   # 262144 elems -> 2048 rows
    ema2 = jax.random.normal(k3, shape2, dtype=jnp.float32)
    cur2 = jax.random.normal(k4, shape2, dtype=jnp.float32)
    ref2 = ref_fn(ema2, cur2)
    out2 = jax.block_until_ready(
        ema_update(ema2, cur2, 0, decay=decay, target_block_bytes=256 << 10))
    assert jnp.allclose(out2, ref2, atol=1e-5, rtol=1e-5), "mismatch (grid f32)"

    # 3) bf16 params: decay=0.999 must not round to 1.0 (f32 blend inside).
    ema3 = ema2.astype(jnp.bfloat16)
    cur3 = cur2.astype(jnp.bfloat16)
    out3 = jax.block_until_ready(ema_update(ema3, cur3, 0, decay=decay))
    assert jnp.allclose(out3.astype(jnp.float32),
                        ref_fn(ema3, cur3).astype(jnp.float32),
                        atol=1e-2, rtol=1e-2), "mismatch (bf16)"

    # 4) Ragged tiny tensor -> plain-jnp fallback path.
    k5, k6 = jax.random.split(jax.random.PRNGKey(2))
    ema4 = jax.random.normal(k5, (7, 13), dtype=jnp.float32)
    cur4 = jax.random.normal(k6, (7, 13), dtype=jnp.float32)
    out4 = jax.block_until_ready(ema_update(ema4, cur4, 0, decay=decay))
    assert jnp.allclose(out4, ref_fn(ema4, cur4), atol=1e-5, rtol=1e-5), \
        "mismatch (ragged fallback)"

    # 5) Large ragged tensor -> Pallas prefix + jnp tail.
    k7, k8 = jax.random.split(jax.random.PRNGKey(3))
    ema5 = jax.random.normal(k7, (521, 251), dtype=jnp.float32)
    cur5 = jax.random.normal(k8, (521, 251), dtype=jnp.float32)
    out5 = jax.block_until_ready(ema_update(ema5, cur5, 0, decay=decay))
    assert jnp.allclose(out5, ref_fn(ema5, cur5), atol=1e-5, rtol=1e-5), \
        "mismatch (ragged prefix/tail)"

    # 6) Traced decay under jit -> SMEM scalar, no per-decay recompile of kernel.
    jit_update = jax.jit(lambda e, c, d: ema_update(e, c, 0, decay=d))
    out6 = jax.block_until_ready(jit_update(ema2, cur2, jnp.float32(decay)))
    assert jnp.allclose(out6, ref2, atol=1e-5, rtol=1e-5), "mismatch (traced decay)"

    # 7) Fused pytree update (small leaves concatenated into one slab).
    tree_e = {"w": ema1, "b": jax.random.normal(jax.random.PRNGKey(4), (4,)),
              "h": ema2}
    tree_c = {"w": cur1, "b": jax.random.normal(jax.random.PRNGKey(5), (4,)),
              "h": cur2}
    tree_o = jax.block_until_ready(ema_update_tree(tree_e, tree_c, decay=decay))
    for name in tree_e:
        assert jnp.allclose(tree_o[name], ref_fn(tree_e[name], tree_c[name]),
                            atol=1e-5, rtol=1e-5), f"mismatch (tree {name})"

    print("KERNEL_OK")
</pallas_src>

<mosaic_0001>
module attributes {stable_mosaic.version = 11 : i64} {
  func.func @_ema_kernel(%arg0: i32, %arg1: memref<1xf32, #tpu.memory_space<smem>>, %arg2: memref<8x128xf32, #tpu.memory_space<vmem>>, %arg3: memref<8x128xf32, #tpu.memory_space<vmem>>, %arg4: memref<8x128xf32, #tpu.memory_space<vmem>>) attributes {dimension_semantics = [#tpu.dimension_semantics<parallel>], iteration_bounds = array<i64: 2>, scalar_prefetch = 0 : i64, scratch_operands = 0 : i64, tpu.core_type = #tpu.core_type<tc>, window_params = [{transform_indices = @transform_0, window_bounds = array<i64: 1>}, {transform_indices = @transform_1, window_bounds = array<i64: 8, 128>}, {transform_indices = @transform_2, window_bounds = array<i64: 8, 128>}, {transform_indices = @transform_3, window_bounds = array<i64: 8, 128>}]} {
    %c0 = arith.constant 0 : index
    %0 = memref.load %arg1[%c0] : memref<1xf32, #tpu.memory_space<smem>>
    %c0_0 = arith.constant 0 : index
    %c0_1 = arith.constant 0 : index
    %1 = vector.load %arg2[%c0_0, %c0_1] : memref<8x128xf32, #tpu.memory_space<vmem>>, vector<8x128xf32>
    %c0_2 = arith.constant 0 : index
    %c0_3 = arith.constant 0 : index
    %2 = vector.load %arg3[%c0_2, %c0_3] : memref<8x128xf32, #tpu.memory_space<vmem>>, vector<8x128xf32>
    %3 = arith.subf %2, %1 : vector<8x128xf32>
    %4 = vector.broadcast %0 : f32 to vector<8x128xf32>
    %5 = arith.mulf %4, %3 : vector<8x128xf32>
    %6 = arith.addf %1, %5 : vector<8x128xf32>
    %c0_4 = arith.constant 0 : index
    %c0_5 = arith.constant 0 : index
    %7 = vector.load %arg4[%c0_4, %c0_5] : memref<8x128xf32, #tpu.memory_space<vmem>>, vector<8x128xf32>
    tpu.vector_store %arg4[%c0_4, %c0_5], %6 {strides = array<i32>} : memref<8x128xf32, #tpu.memory_space<vmem>>, vector<8x128xf32>,
    return
  }
  func.func @transform_0(%arg0: i32) -> i32 {
    %c0_i32 = arith.constant 0 : i32
    %c0_i32_0 = arith.constant 0 : i32
    return %c0_i32 : i32
  }
  func.func @transform_1(%arg0: i32) -> (i32, i32) {
    %c0_i32 = arith.constant 0 : i32
    %c0_i32_0 = arith.constant 0 : i32
    return %arg0, %c0_i32 : i32, i32
  }
  func.func @transform_2(%arg0: i32) -> (i32, i32) {
    %c0_i32 = arith.constant 0 : i32
    %c0_i32_0 = arith.constant 0 : i32
    return %arg0, %c0_i32 : i32, i32
  }
  func.func @transform_3(%arg0: i32) -> (i32, i32) {
    %c0_i32 = arith.constant 0 : i32
    %c0_i32_0 = arith.constant 0 : i32
    return %arg0, %c0_i32 : i32, i32
  }
}

</mosaic_0001>

<bundles_post_ra>
// kernel: tpu_custom_call.1
= control target key start
LH: loop header
LB: loop body
LE: loop exit
PB: predicated region body
PF: predicated region fallthrough
CT: control target
= control target key end

     0   :  { %s624_s0 = inlined_call_operand.<no memory space> [shape: f32[1], index: 0, kind: input, shape index: {}]   ;;  %s625_s1 = inlined_call_operand.hbm [shape: f32[16,128], index: 1, kind: input, shape index: {}, may-alias: {1,3}]   ;;  %s626_s2 = inlined_call_operand.vmem [shape: f32[16,128], index: 2, kind: input, shape index: {}]   ;;  %s627_s3 = inlined_call_operand.hbm [shape: f32[16,128], index: 3, kind: output, shape index: {}, may-alias: {1,3}]  }
   0x1   :  { %8 = sst [smem:[#allocation2]] %s624_s0 }
   0x2   :  { %9 = vsyncpa [#allocation4], 0 }
   0x3   :  { %11 = vsyncpa [#allocation4 + $0x1], 0 }
   0x4   :  { %12 = vsyncpa [#allocation5], 0 }
   0x5   :  { %14 = vsyncpa [#allocation5 + $0x1], 0  ;;  %s492_s14 = smov 0   ;;  %s494_s15 = smov 0  }
   0x6   :  { %s496_s16 = smov 0   ;;  %s498_s17 = smov 0  }
   0x7 LB: > { %s513_s0 = sadd.s32 4294967295, %s467_s17   ;;  %s312_s18 = sadd.s32 4294967294, %s467_s17   ;;  %s467_s17 = sphi %s498_s17, %s637_s17   ;;  %s463_s16 = sphi %s496_s16, %s636_s16   ;;  %s459_s15 = sphi %s494_s15, %s635_s15   ;;  %s455_s14 = sphi %s492_s14, %s634_s14  }
   0x8   : > { %s517_s19 = sadd.s32 1, %s467_s17   ;;  %s48_s20 = sadd.s32 1, %s463_s16 }
   0x9   : > { %s45_s21 = ssub.s32 %s467_s17, %s517_s19  ;;  %p55_p0 = scmp.ne.s32.totalorder %s463_s16, %s459_s15 }
   0xa   : > { %p46_p1 = scmp.eq.s32.totalorder %s45_s21, 0  ;;  %p56_p2 = scmp.eq.s32.totalorder %s467_s17, 0 }
   0xb   : > { %p61_p3 = scmp.ne.s32.totalorder %s459_s15, %s455_s14  ;;  %p62_p4 = scmp.eq.s32.totalorder %s513_s0, 0 }
   0xc   : > { %s529_s22 = scalar_select %p46_p1, %s463_s16, %s48_s20  }
   0xd   : > { %p531_p5 = por %p56_p2, %p55_p0  ;;  %p535_p6 = por %p62_p4, %p61_p3 }
   0xe   : > { %p111_p7 = scmp.eq.s32.totalorder %s513_s0, 1  ;;  %p117_p8 = scmp.eq.s32.totalorder %s312_s18, 1 }
   0xf   : > { %p337_p10 = scmp.lt.s32.totalorder %s467_s17, 2  ;;  %s140_s27 = sand.u32 1, %s463_s16  }
  0x10   : > { %p542_p11 = por %p111_p7, %p55_p0  ;;  %p546_p12 = por %p117_p8, %p61_p3 }
  0x11   : > { %s316_s28 = sshll.u32 %s467_s17, 3  ;;  %s315_s29 = sshll.u32 %s140_s27, 3 }
  0x12   : > { %s148_s5 = scalar_lea.hbm %s625_s1, %s316_s28  ;;  %s144_s7 = scalar_lea.vmem [#allocation3], %s315_s29 }
  0x13   : > { %s150_s6 = sshll.u32 %s148_s5, 4  ;;  %s152_s8 = sshll.u32 %s144_s7, 4  ;;  %s151_s6 = int_to_ptr.hbm [resolvable:$true] %s150_s6  ;;  %s153_s8 = int_to_ptr.vmem [resolvable:$true] %s152_s8 }
  0x14   : > { %p557_p13 = pnand %p337_p10, %p531_p5  ;;  %p317_p0 = scmp.ge.s32.totalorder %s467_s17, 1 }
  0x15   : > { %p164_p1 = scmp.lt.s32.totalorder %s467_s17, 3  ;;  %s141_s10 = scalar_lea.sflag [#allocation4], %s140_s27 }
  0x16   : > { %s371_s11 = sshra.s32 %s151_s6, 4  ;;  %p375_p3 = pneg %p557_p13  ;;  %s372_s11 = int_to_ptr.hbm [resolvable:$true] %s371_s11 }
  0x17   : > { %s373_s12 = scalar_lea.hbm %s372_s11, 8  ;;  %s378_s20 = scalar_lea.hbm %s625_s1, 16 }
  0x18   : > { %p374_p2 = scmp.ne.s32.totalorder %s372_s11, %s373_s12  ;;  %p379_p5 = scmp.lt.s32.totalorder %s372_s11, %s625_s1 }
  0x19   : > { %p380_p8 = scmp.lt.s32.totalorder %s378_s20, %s373_s12 }
  0x1a   : > { %p376_p4 = pnand %p375_p3, %p374_p2 }
  0x1b   : > { %p381_p10 = por %p380_p8, %p379_p5 }
  0x1c   : > { %p377_p7 = pneg %p376_p4 }
  0x1e   : > { %p382_p9 = pnand %p381_p10, %p377_p7 }
  0x20   : > { %385 = shalt.err (!%p382_p9)
}
  0x21   : > { %332 = dma.hbm_to_vmem [thread:$0]  (!%p557_p13), %s151_s6, 128, %s153_s8, %s141_s10  }
  0x22   : > { %p165_p2 = pnand %p317_p0, %p164_p1 }
  0x23   : > { %s578_s27 = sand.u32 (!%p165_p2), 1, %s459_s15  }
  0x24   : > { %168 = sbr.rel (%p165_p2) target bundleno = 60 (0x3c), region = 32  ;;  %s318_s28 = sshll.u32 (!%p165_p2), %s578_s27, 3 }
  0x25   : > { %s171_s29 = scalar_lea.sflag (!%p165_p2), [#allocation4], %s578_s27  ;;  %s174_s30 = scalar_lea.vmem (!%p165_p2), [#allocation3], %s318_s28 }
  0x29   : > { %446 = dma.done.wait (%p535_p6), %s171_s29, 128  }
  0x2a   : > { %448 = vsyncadd (%p535_p6), %s171_s29, 4294967168  ;;  %p202_p9 = scmp.lt.s32.totalorder %s513_s0, 1  ;;  %s206_s4 = sld [smem:[#allocation2]]  ;;  %v207_v0 = vld [vmem:[%s174_s30] sm:$0xff] }
  0x2b   : > { %s322_s7 = sshll.u32 %s513_s0, 3  ;;  %s201_s24 = scalar_lea.vmem [#allocation6], %s318_s28 }
  0x2c   : > { %s203_s5 = scalar_select %p202_p9, %s513_s0, 1 }
  0x2d   : > { %s225_s13 = scalar_lea.hbm %s627_s3, %s322_s7  ;;  %s227_s18 = sshll.u32 %s201_s24, 4  ;;  %s228_s18 = int_to_ptr.vmem [resolvable:$true] %s227_s18 }
  0x2e   : > { %s320_s6 = sshll.u32 %s203_s5, 3  ;;  %s229_s20 = sshll.u32 %s225_s13, 4  ;;  %s230_s20 = int_to_ptr.hbm [resolvable:$true] %s229_s20 }
  0x2f   : > { %s205_s10 = scalar_lea.vmem %s626_s2, %s320_s6  ;;  %s215_s0 = scalar_lea.sflag [#allocation5], %s578_s27 }
  0x30   : > { %v208_v1 = vld [vmem:[%s205_s10] sm:$0xff]  ;;  %v210_v2 = vstv %s206_s4  ;;  %s415_s21 = sshra.s32 %s230_s20, 4  ;;  %s421_s4 = scalar_lea.hbm %s627_s3, 16  ;;  %s416_s21 = int_to_ptr.hbm [resolvable:$true] %s415_s21 }
  0x31   : > { %v209_v3 = vsub.f32 %v208_v1, %v207_v0  ;;  %s417_s23 = scalar_lea.hbm %s416_s21, 8  ;;  %p422_p1 = scmp.lt.s32.totalorder %s416_s21, %s627_s3 }
  0x32   : > { %p418_p6 = scmp.ne.s32.totalorder %s416_s21, %s417_s23  ;;  %p423_p3 = scmp.lt.s32.totalorder %s421_s4, %s417_s23 }
  0x33   : > { %v211_v4 = vmul.f32 %v210_v2, %v209_v3 }
  0x34   : > { %p419_p13 = pnand %p418_p6, %p542_p11  ;;  %p424_p4 = por %p423_p3, %p422_p1 }
  0x35   : > { %v212_v5 = vadd.f32 %v211_v4, %v207_v0 }
  0x36   : > { %p420_p0 = pneg %p419_p13 }
  0x37   : > { %213 = vst [vmem:[%s201_s24] sm:$0xff] %v212_v5 }
  0x38   : > { %p425_p7 = pnand %p424_p4, %p420_p0 }
  0x3a   : > { %428 = shalt.err (!%p425_p7)
}
  0x3b   : > { %327 = dma.vmem_to_hbm [thread:$0]  (%p542_p11), %s228_s18, 128, %s230_s20, %s215_s0  }
  0x3c PF: > { %s241_s27 = sand.u32 1, %s455_s14   ;;  %p633_p5 = scmp.ge.s32.totalorder %s467_s17, 2 }
  0x3d   : > { %s242_s6 = scalar_lea.sflag [#allocation5], %s241_s27 }
  0x3e   : > { %p334_p8 = pnand %p633_p5, %p546_p12 }
  0x40   : > { %p335_p10 = pneg %p334_p8 }
  0x42   : > { %450 = dma.done.wait (%p335_p10), %s242_s6, 128  }
  0x43   : > { %452 = vsyncadd (%p335_p10), %s242_s6, 4294967168  ;;  %p17_p2 = scmp.ge.s32.totalorder %s517_s19, 4   ;;  %s634_s14 = smov %s459_s15 }
  0x44   : > { %s635_s15 = smov %s463_s16  ;;  %s636_s16 = smov %s529_s22 }
  0x45   : > { %s637_s17 = smov %s517_s19  ;;  %19 = sbr.rel (!%p17_p2) target bundleno = 7 (0x7), region = 80 }
  0x4a   :  { %248 = vsyncpa [#allocation4], 1 }
  0x4b   :  { %250 = vsyncpa [#allocation4 + $0x1], 1 }
  0x4c   :  { %251 = vsyncpa [#allocation5], 1 }
  0x4d   :  { %253 = vsyncpa [#allocation5 + $0x1], 1 }

</bundles_post_ra>
